<compile_context>
chip_gen: v6e
topology: v6e:2x2x1
jax: 0.10.0
libtpu: 0.0.40
codegen_flags: <defaults>
</compile_context>

<pallas_src>
import jax
import jax.numpy as jnp
from jax.experimental import pallas as pl
from jax.experimental.pallas import tpu as pltpu

IN_FEATURES = 3072
HIDDEN = 10
OUT_FEATURES = 5
HIDDEN_PAD = 128            # lane-dense hidden width (padded cols are exact zeros)
DEFAULT_TM = 1024           # ~24 MiB double-buffered f32 x; fits 48 MiB VMEM limit
VMEM_LIMIT_BYTES = 48 * 1024 * 1024


def mlp_kernel(x_ref, w1_ref, b1_ref, w2_ref, b2_ref, o_ref):
    # fc1: cast x f32 -> bf16 in-kernel (hidden under DMA), MXU dot, f32 accum.
    x_bf = x_ref[...].astype(jnp.bfloat16)
    h = jnp.dot(x_bf, w1_ref[...], preferred_element_type=jnp.float32)
    # bias + ReLU in f32 on the VPU (padded hidden columns stay exactly zero).
    h = jnp.maximum(h + b1_ref[...], 0.0)
    # fc2: bf16 MXU dot with f32 accumulation; padded w2 rows are zero.
    out = jnp.dot(h.astype(jnp.bfloat16), w2_ref[...],
                  preferred_element_type=jnp.float32)
    out = out + b2_ref[...]
    # Narrow store: only the 5 real output columns go back to HBM.
    o_ref[...] = out[:, :OUT_FEATURES].astype(o_ref.dtype)


def _round_up8(n):
    return max(8, ((n + 7) // 8) * 8)


def random_model_forward(x, w1, b1, w2, b2, *, tm=DEFAULT_TM):
    """x: (B, 3072) f32; w1: (3072, 10); b1: (1, 10); w2: (10, 5); b2: (1, 5)."""
    B = x.shape[0]

    # Batch tile: multiple of 8; no HBM-side padding of x (ragged last block is
    # handled by Pallas: OOB input rows are garbage, OOB output rows masked).
    TM = min(_round_up8(tm), _round_up8(B))
    # Give the "parallel" batch axis at least 2 grid steps when B allows it, so
    # v7x's 2 TensorCores both get work (measured-neutral on v5e/v6e).
    if pl.cdiv(B, TM) == 1 and B >= 16:
        TM = _round_up8(pl.cdiv(B, 2))
    grid = (pl.cdiv(B, TM),)

    # Lane-dense padding of the tiny resident weights/biases (zeros -> exact
    # math); weights are one-time, negligible HBM traffic.
    w1p = jnp.pad(w1, ((0, 0), (0, HIDDEN_PAD - HIDDEN))).astype(jnp.bfloat16)
    b1p = jnp.pad(b1, ((0, 0), (0, HIDDEN_PAD - HIDDEN)))                      # f32
    w2p = jnp.pad(
        w2, ((0, HIDDEN_PAD - HIDDEN), (0, HIDDEN_PAD - OUT_FEATURES))
    ).astype(jnp.bfloat16)
    b2p = jnp.pad(b2, ((0, 0), (0, HIDDEN_PAD - OUT_FEATURES)))                # f32

    out = pl.pallas_call(
        mlp_kernel,
        out_shape=jax.ShapeDtypeStruct((B, OUT_FEATURES), jnp.float32),
        grid=grid,
        in_specs=[
            pl.BlockSpec((TM, IN_FEATURES), lambda i: (i, 0)),            # x: streamed f32
            pl.BlockSpec((IN_FEATURES, HIDDEN_PAD), lambda i: (0, 0)),    # w1: resident bf16
            pl.BlockSpec((1, HIDDEN_PAD), lambda i: (0, 0)),              # b1: resident f32
            pl.BlockSpec((HIDDEN_PAD, HIDDEN_PAD), lambda i: (0, 0)),     # w2: resident bf16
            pl.BlockSpec((1, HIDDEN_PAD), lambda i: (0, 0)),              # b2: resident f32
        ],
        out_specs=pl.BlockSpec((TM, OUT_FEATURES), lambda i: (i, 0)),     # narrow (B,5) f32
        compiler_params=pltpu.CompilerParams(
            dimension_semantics=("parallel",),
            vmem_limit_bytes=VMEM_LIMIT_BYTES,
        ),
    )(x, w1p, b1p, w2p, b2p)
    return out


def init_params(key):
    # Deterministic init mimicking nn.Linear's uniform(-1/sqrt(in), 1/sqrt(in)).
    k1, k2, k3, k4 = jax.random.split(key, 4)
    bound1 = 1.0 / jnp.sqrt(IN_FEATURES)
    bound2 = 1.0 / jnp.sqrt(HIDDEN)
    w1 = jax.random.uniform(k1, (IN_FEATURES, HIDDEN), jnp.float32, -bound1, bound1)
    b1 = jax.random.uniform(k2, (1, HIDDEN), jnp.float32, -bound1, bound1)
    w2 = jax.random.uniform(k3, (HIDDEN, OUT_FEATURES), jnp.float32, -bound2, bound2)
    b2 = jax.random.uniform(k4, (1, OUT_FEATURES), jnp.float32, -bound2, bound2)
    return w1, b1, w2, b2


if __name__ == "__main__":
    key = jax.random.PRNGKey(0)
    k_x, k_p = jax.random.split(key)
    B = 4
    x = jax.random.normal(k_x, (B, IN_FEATURES), jnp.float32)
    w1, b1, w2, b2 = init_params(k_p)

    out = random_model_forward(x, w1, b1, w2, b2)
    jax.block_until_ready(out)
    assert out.shape == (B, OUT_FEATURES)

    # Reference applying the same bf16 quantization the kernel uses (bf16 MXU
    # inputs, f32 accumulation) -- tight tolerance.
    x_q = x.astype(jnp.bfloat16).astype(jnp.float32)
    w1_q = w1.astype(jnp.bfloat16).astype(jnp.float32)
    h_ref = jnp.maximum(
        jnp.dot(x_q, w1_q, precision=jax.lax.Precision.HIGHEST) + b1, 0.0)
    h_q = h_ref.astype(jnp.bfloat16).astype(jnp.float32)
    w2_q = w2.astype(jnp.bfloat16).astype(jnp.float32)
    ref_q = jnp.dot(h_q, w2_q, precision=jax.lax.Precision.HIGHEST) + b2
    assert jnp.allclose(out, ref_q, atol=2e-3, rtol=2e-3)

    # Sanity check against the full-f32 PyTorch-equivalent forward (loose
    # tolerance accounts for the bf16 MXU-input casts).
    ref_f32 = jnp.maximum(
        jnp.dot(x, w1, precision=jax.lax.Precision.HIGHEST) + b1, 0.0)
    ref_f32 = jnp.dot(ref_f32, w2, precision=jax.lax.Precision.HIGHEST) + b2
    assert jnp.allclose(out, ref_f32, atol=3e-2, rtol=3e-2)

    print("KERNEL_OK")
</pallas_src>

<mosaic_0001>
module attributes {stable_mosaic.version = 11 : i64} {
  func.func @mlp_kernel(%arg0: i32, %arg1: memref<8x3072xf32, #tpu.memory_space<vmem>>, %arg2: memref<3072x128xbf16, #tpu.memory_space<vmem>>, %arg3: memref<1x128xf32, #tpu.memory_space<vmem>>, %arg4: memref<128x128xbf16, #tpu.memory_space<vmem>>, %arg5: memref<1x128xf32, #tpu.memory_space<vmem>>, %arg6: memref<8x5xf32, #tpu.memory_space<vmem>>) attributes {dimension_semantics = [#tpu.dimension_semantics<parallel>], iteration_bounds = array<i64: 1>, scalar_prefetch = 0 : i64, scratch_operands = 0 : i64, tpu.core_type = #tpu.core_type<tc>, window_params = [{transform_indices = @transform_0, window_bounds = array<i64: 8, 3072>}, {pipeline_mode = #tpu.pipeline_mode<synchronous>, transform_indices = @transform_1, window_bounds = array<i64: 3072, 128>}, {pipeline_mode = #tpu.pipeline_mode<synchronous>, transform_indices = @transform_2, window_bounds = array<i64: 1, 128>}, {pipeline_mode = #tpu.pipeline_mode<synchronous>, transform_indices = @transform_3, window_bounds = array<i64: 128, 128>}, {pipeline_mode = #tpu.pipeline_mode<synchronous>, transform_indices = @transform_4, window_bounds = array<i64: 1, 128>}, {transform_indices = @transform_5, window_bounds = array<i64: 8, 5>}]} {
    %c0 = arith.constant 0 : index
    %c0_0 = arith.constant 0 : index
    %0 = vector.load %arg1[%c0, %c0_0] : memref<8x3072xf32, #tpu.memory_space<vmem>>, vector<8x3072xf32>
    %1 = arith.truncf %0 : vector<8x3072xf32> to vector<8x3072xbf16>
    %c0_1 = arith.constant 0 : index
    %c0_2 = arith.constant 0 : index
    %2 = vector.load %arg2[%c0_1, %c0_2] : memref<3072x128xbf16, #tpu.memory_space<vmem>>, vector<3072x128xbf16>
    %cst = arith.constant dense<0.000000e+00> : vector<8x128xf32>
    %3 = tpu.matmul %1, %2, %cst {dimension_numbers = #tpu.dot_dimension_numbers<[1], [0], [0], [1], [0, 0, 1, 1], [], []>} : vector<8x3072xbf16>, vector<3072x128xbf16>, vector<8x128xf32> -> vector<8x128xf32>
    %c0_3 = arith.constant 0 : index
    %c0_4 = arith.constant 0 : index
    %4 = vector.load %arg3[%c0_3, %c0_4] : memref<1x128xf32, #tpu.memory_space<vmem>>, vector<1x128xf32>
    %5 = vector.broadcast %4 : vector<1x128xf32> to vector<8x128xf32>
    %6 = arith.addf %3, %5 : vector<8x128xf32>
    %cst_5 = arith.constant 0.000000e+00 : f32
    %7 = vector.broadcast %cst_5 : f32 to vector<8x128xf32>
    %8 = arith.maximumf %6, %7 : vector<8x128xf32>
    %9 = arith.truncf %8 : vector<8x128xf32> to vector<8x128xbf16>
    %c0_6 = arith.constant 0 : index
    %c0_7 = arith.constant 0 : index
    %10 = vector.load %arg4[%c0_6, %c0_7] : memref<128x128xbf16, #tpu.memory_space<vmem>>, vector<128x128xbf16>
    %cst_8 = arith.constant dense<0.000000e+00> : vector<8x128xf32>
    %11 = tpu.matmul %9, %10, %cst_8 {dimension_numbers = #tpu.dot_dimension_numbers<[1], [0], [0], [1], [0, 0, 1, 1], [], []>} : vector<8x128xbf16>, vector<128x128xbf16>, vector<8x128xf32> -> vector<8x128xf32>
    %c0_9 = arith.constant 0 : index
    %c0_10 = arith.constant 0 : index
    %12 = vector.load %arg5[%c0_9, %c0_10] : memref<1x128xf32, #tpu.memory_space<vmem>>, vector<1x128xf32>
    %13 = vector.broadcast %12 : vector<1x128xf32> to vector<8x128xf32>
    %14 = arith.addf %11, %13 : vector<8x128xf32>
    %15 = vector.extract_strided_slice %14 {offsets = [0, 0], sizes = [8, 5], strides = [1, 1]} : vector<8x128xf32> to vector<8x5xf32>
    %c0_11 = arith.constant 0 : index
    %c0_12 = arith.constant 0 : index
    %16 = vector.load %arg6[%c0_11, %c0_12] : memref<8x5xf32, #tpu.memory_space<vmem>>, vector<8x5xf32>
    tpu.vector_store %arg6[%c0_11, %c0_12], %15 {strides = array<i32>} : memref<8x5xf32, #tpu.memory_space<vmem>>, vector<8x5xf32>,
    return
  }
  func.func @transform_0(%arg0: i32) -> (i32, i32) {
    %c0_i32 = arith.constant 0 : i32
    %c0_i32_0 = arith.constant 0 : i32
    return %arg0, %c0_i32 : i32, i32
  }
  func.func @transform_1(%arg0: i32) -> (i32, i32) {
    %c0_i32 = arith.constant 0 : i32
    %c0_i32_0 = arith.constant 0 : i32
    %c0_i32_1 = arith.constant 0 : i32
    return %c0_i32, %c0_i32_0 : i32, i32
  }
  func.func @transform_2(%arg0: i32) -> (i32, i32) {
    %c0_i32 = arith.constant 0 : i32
    %c0_i32_0 = arith.constant 0 : i32
    %c0_i32_1 = arith.constant 0 : i32
    return %c0_i32, %c0_i32_0 : i32, i32
  }
  func.func @transform_3(%arg0: i32) -> (i32, i32) {
    %c0_i32 = arith.constant 0 : i32
    %c0_i32_0 = arith.constant 0 : i32
    %c0_i32_1 = arith.constant 0 : i32
    return %c0_i32, %c0_i32_0 : i32, i32
  }
  func.func @transform_4(%arg0: i32) -> (i32, i32) {
    %c0_i32 = arith.constant 0 : i32
    %c0_i32_0 = arith.constant 0 : i32
    %c0_i32_1 = arith.constant 0 : i32
    return %c0_i32, %c0_i32_0 : i32, i32
  }
  func.func @transform_5(%arg0: i32) -> (i32, i32) {
    %c0_i32 = arith.constant 0 : i32
    %c0_i32_0 = arith.constant 0 : i32
    return %arg0, %c0_i32 : i32, i32
  }
}

</mosaic_0001>

<bundles_post_ra>
// kernel: tpu_custom_call.1
= control target key start
LH: loop header
LB: loop body
LE: loop exit
PB: predicated region body
PF: predicated region fallthrough
CT: control target
= control target key end

     0   :  { %10 = vsyncpa [#allocation3], 0  ;;  %s3197_s0 = inlined_call_operand.hbm [shape: f32[4,3072], index: 0, kind: input, shape index: {}]   ;;  %s3198_s1 = inlined_call_operand.hbm [shape: bf16[3072,128], index: 1, kind: input, shape index: {}]   ;;  %s3199_s2 = inlined_call_operand.vmem [shape: f32[1,128], index: 2, kind: input, shape index: {}]   ;;  %s3200_s3 = inlined_call_operand.hbm [shape: bf16[128,128], index: 3, kind: input, shape index: {}]   ;;  %s3201_s4 = inlined_call_operand.vmem [shape: f32[1,128], index: 4, kind: input, shape index: {}]   ;;  %s3202_s5 = inlined_call_operand.hbm [shape: f32[4,5], index: 5, kind: output, shape index: {}]  }
   0x1   :  { %11 = vsyncpa [#allocation6], 0 }
   0x2   :  { %12 = vsyncpa [#allocation4], 0 }
   0x3   :  { %17 = vsyncadd [#allocation3], 1536  ;;  %s3130_s18 = smov [#allocation5]  }
   0x4   :  { %s30_s19 = sshll.u32 %s3130_s18, 4  ;;  %s31_s19 = int_to_ptr.vmem [resolvable:$true] %s30_s19 }
   0x5   :  { %s3052_s20 = scalar_lea.vmem %s31_s19, 24576  ;;  %p3057_p1 = scmp.lt.s32.totalorder %s31_s19, %s31_s19 }
   0x6   :  { %p3053_p0 = scmp.ne.s32.totalorder %s31_s19, %s3052_s20  ;;  %p3058_p2 = scmp.lt.s32.totalorder %s3052_s20, %s3052_s20 }
   0x8   :  { %p3059_p3 = por %p3058_p2, %p3057_p1 }
   0xa   :  { %p3060_p4 = pnand %p3059_p3, %p3053_p0 }
   0xc   :  { %3063 = shalt.err (!%p3060_p4)
}
   0xd   :  { %s3131_s21 = smov 64   ;;  %s3132_s22 = smov 4  }
   0xe   :  { %36 = dma.hbm_to_vmem [thread:$0]  %s3198_s1, 24576, %s31_s19, [#allocation6], %s3131_s21, %s3131_s21, %s3132_s22  }
   0xf   :  { %s3133_s25 = smov [#allocation2]  }
  0x10   :  { %s18_s26 = sshll.u32 %s3133_s25, 4  ;;  %s19_s26 = int_to_ptr.vmem [resolvable:$true] %s18_s26 }
  0x11   :  { %s3072_s27 = scalar_lea.vmem %s19_s26, 1536  ;;  %s3076_s28 = scalar_lea.vmem %s19_s26, 3072 }
  0x12   :  { %p3073_p5 = scmp.ne.s32.totalorder %s19_s26, %s3072_s27  ;;  %p3077_p6 = scmp.lt.s32.totalorder %s19_s26, %s19_s26 }
  0x13   :  { %p3078_p7 = scmp.lt.s32.totalorder %s3076_s28, %s3072_s27 }
  0x15   :  { %p3079_p8 = por %p3078_p7, %p3077_p6 }
  0x17   :  { %p3080_p9 = pnand %p3079_p8, %p3073_p5 }
  0x19   :  { %3083 = shalt.err (!%p3080_p9)
}
  0x1a   :  { %s3134_s29 = smov 1536   ;;  %s3135_s30 = smov 96  }
  0x1b   :  { %24 = dma.hbm_to_vmem [thread:$0]  %s3197_s0, 1536, %s19_s26, [#allocation3], %s3134_s29, %s3134_s29, %s3135_s30  }
  0x1c   :  { %s3136_s8 = smov [#allocation7]  }
  0x1d   :  { %s44_s9 = sshll.u32 %s3136_s8, 4  ;;  %s45_s9 = int_to_ptr.vmem [resolvable:$true] %s44_s9 }
  0x1e   :  { %s3092_s1 = scalar_lea.vmem %s45_s9, 1024  ;;  %p3097_p11 = scmp.lt.s32.totalorder %s45_s9, %s45_s9 }
  0x1f   :  { %p3093_p10 = scmp.ne.s32.totalorder %s45_s9, %s3092_s1  ;;  %p3098_p12 = scmp.lt.s32.totalorder %s3092_s1, %s3092_s1 }
  0x21   :  { %p3099_p13 = por %p3098_p12, %p3097_p11 }
  0x23   :  { %p3100_p0 = pnand %p3099_p13, %p3093_p10 }
  0x25   :  { %3103 = shalt.err (!%p3100_p0)
}
  0x26   :  { %50 = dma.hbm_to_vmem [thread:$0]  %s3200_s3, 1024, %s45_s9, [#allocation6], %s3131_s21, %s3131_s21, %s3132_s22  }
  0x27   :  { %3124 = dma.done.wait [#allocation3], 3072  }
  0x28   :  { %3125 = vsyncadd [#allocation3], 4294964224 }
  0x29   :  { %3126 = dma.done.wait [#allocation6], 25600  }
  0x2a   :  { %3127 = vsyncadd [#allocation6], 4294941696  ;;  %v2844_v0 = vld [vmem:[#allocation5 + $0x78] sm:$0xff]   ;;  %v2848_v4 = vld [vmem:[#allocation5 + $0x70] sm:$0xff]   ;;  %vm3138_vm0 = vmmov 0   ;;  %vm2319_vm1 = vcmask 39936  }
  0x2b   :  { %v2845_v1 = vld [vmem:[#allocation5 + $0xf8] sm:$0xff]   ;;  %2541 = vmatprep.subr.bf16.mxu0 %v2844_v0  ;;  %v2849_v5 = vld [vmem:[#allocation5 + $0xf0] sm:$0xff]   ;;  %v2852_v8 = vld [vmem:[#allocation5 + $0x68] sm:$0xff]  }
  0x2c   :  { %v2846_v2 = vld [vmem:[#allocation5 + $0x38] sm:$0xff]   ;;  %2563 = vmatprep.subr.bf16.mxu1 %v2845_v1  ;;  %v2850_v6 = vld [vmem:[#allocation5 + $0x30] sm:$0xff]   ;;  %v2853_v9 = vld [vmem:[#allocation5 + $0xe8] sm:$0xff]  }
  0x2d   :  { %v2847_v3 = vld [vmem:[#allocation5 + $0xb8] sm:$0xff]   ;;  %2542 = vmatpush3.bf16.msra.mxu0 %v2846_v2  ;;  %v2851_v7 = vld [vmem:[#allocation5 + $0xb0] sm:$0xff]   ;;  %v2854_v10 = vld [vmem:[#allocation5 + $0x28] sm:$0xff]  }
  0x2e   :  { %2564 = vmatpush3.bf16.msra.mxu1 %v2847_v3  ;;  %2543 = vmatprep.subr.bf16.mxu0 %v2848_v4  ;;  %v2855_v11 = vld [vmem:[#allocation5 + $0xa8] sm:$0xff]   ;;  %v2856_v12 = vld [vmem:[#allocation5 + $0x60] sm:$0xff]   ;;  %v2860_v16 = vld [vmem:[#allocation5 + $0x58] sm:$0xff]  }
  0x2f   :  { %2565 = vmatprep.subr.bf16.mxu1 %v2849_v5  ;;  %v2857_v13 = vld [vmem:[#allocation5 + $0xe0] sm:$0xff]   ;;  %v2861_v17 = vld [vmem:[#allocation5 + $0xd8] sm:$0xff]   ;;  %v2864_v20 = vld [vmem:[#allocation5 + $0x50] sm:$0xff]  }
  0x30   :  { %v2858_v14 = vld [vmem:[#allocation5 + $0x20] sm:$0xff]   ;;  %v2862_v18 = vld [vmem:[#allocation5 + $0x18] sm:$0xff]   ;;  %v2865_v21 = vld [vmem:[#allocation5 + $0xd0] sm:$0xff]  }
  0x31   :  { %2544 = vmatpush3.bf16.msra.mxu0 %v2850_v6  ;;  %v2859_v15 = vld [vmem:[#allocation5 + $0xa0] sm:$0xff]   ;;  %v2863_v19 = vld [vmem:[#allocation5 + $0x98] sm:$0xff]   ;;  %v2866_v22 = vld [vmem:[#allocation5 + $0x10] sm:$0xff]  }
  0x32   :  { %2566 = vmatpush3.bf16.msra.mxu1 %v2851_v7  ;;  %2545 = vmatprep.subr.bf16.mxu0 %v2852_v8  ;;  %v2867_v23 = vld [vmem:[#allocation5 + $0x90] sm:$0xff]   ;;  %v2868_v24 = vld [vmem:[#allocation5 + $0x48] sm:$0xff]   ;;  %v2872_v28 = vld [vmem:[#allocation5 + $0x40] sm:$0xff]  }
  0x33   :  { %2567 = vmatprep.subr.bf16.mxu1 %v2853_v9  ;;  %v2869_v25 = vld [vmem:[#allocation5 + $0xc8] sm:$0xff]   ;;  %v2873_v29 = vld [vmem:[#allocation5 + $0xc0] sm:$0xff]   ;;  %v2876_v40 = vld [vmem:[#allocation5 + $0x178] sm:$0xff]  }
  0x34   :  { %v2870_v26 = vld [vmem:[#allocation5 + $0x8] sm:$0xff]   ;;  %v2874_v30 = vld [vmem:[#allocation5] sm:$0xff]   ;;  %v2877_v43 = vld [vmem:[#allocation5 + $0x1f8] sm:$0xff]  }
  0x35   :  { %2546 = vmatpush3.bf16.msra.mxu0 %v2854_v10  ;;  %v2871_v27 = vld [vmem:[#allocation5 + $0x88] sm:$0xff]   ;;  %v2875_v31 = vld [vmem:[#allocation5 + $0x80] sm:$0xff]   ;;  %v2878_v46 = vld [vmem:[#allocation5 + $0x138] sm:$0xff]  }
  0x36   :  { %2568 = vmatpush3.bf16.msra.mxu1 %v2855_v11  ;;  %2547 = vmatprep.subr.bf16.mxu0 %v2856_v12  ;;  %v63_v32 = vld [vmem:[#allocation2] sm:$0xff]  ;;  %v64_v34 = vld [vmem:[#allocation2 + $0x8] sm:$0xff]  ;;  %v2879_v47 = vld [vmem:[#allocation5 + $0x1b8] sm:$0xff]  }
  0x37   :  { %2569 = vmatprep.subr.bf16.mxu1 %v2857_v13  ;;  %v75_v33 = vld [vmem:[#allocation2 + $0x60] sm:$0xff]  ;;  %v76_v37 = vld [vmem:[#allocation2 + $0x68] sm:$0xff]  ;;  %v2880_v48 = vld [vmem:[#allocation5 + $0x170] sm:$0xff]  }
  0x38   :  { %v111_v35 = vcombine.low %v63_v32, %v75_v33  ;;  %v112_v36 = vcombine.high %v63_v32, %v75_v33  ;;  %v113_v38 = vcombine.low %v64_v34, %v76_v37  ;;  %v114_v39 = vcombine.high %v64_v34, %v76_v37  ;;  %v2881_v49 = vld [vmem:[#allocation5 + $0x1f0] sm:$0xff]   ;;  %v2884_v52 = vld [vmem:[#allocation5 + $0x168] sm:$0xff]   ;;  %v2888_v56 = vld [vmem:[#allocation5 + $0x160] sm:$0xff]  }
  0x39   :  { %2548 = vmatpush3.bf16.msra.mxu0 %v2858_v14  ;;  %v2882_v50 = vld [vmem:[#allocation5 + $0x130] sm:$0xff]   ;;  %v2885_v53 = vld [vmem:[#allocation5 + $0x1e8] sm:$0xff]   ;;  %v2889_v57 = vld [vmem:[#allocation5 + $0x1e0] sm:$0xff]  }
  0x3a   :  { %2570 = vmatpush3.bf16.msra.mxu1 %v2859_v15  ;;  %2549 = vmatprep.subr.bf16.mxu0 %v2860_v16  ;;  %v159_v41 = vpack.c.bf16 %v111_v35, %v111_v35  ;;  %v160_v42 = vpack.c.bf16 %v112_v36, %v112_v36  ;;  %v161_v44 = vpack.c.bf16 %v113_v38, %v113_v38  ;;  %v2883_v51 = vld [vmem:[#allocation5 + $0x1b0] sm:$0xff]   ;;  %v2886_v54 = vld [vmem:[#allocation5 + $0x128] sm:$0xff]   ;;  %v2890_v58 = vld [vmem:[#allocation5 + $0x120] sm:$0xff]  }
  0x3b   :  { %2571 = vmatprep.subr.bf16.mxu1 %v2861_v17  ;;  %v162_v45 = vpack.c.bf16 %v114_v39, %v114_v39  ;;  %v2887_v55 = vld [vmem:[#allocation5 + $0x1a8] sm:$0xff]   ;;  %v2891_v59 = vld [vmem:[#allocation5 + $0x1a0] sm:$0xff]   ;;  %v2892_v60 = vld [vmem:[#allocation5 + $0x158] sm:$0xff]  }
  0x3c   :  { %1758 = vmatprep.mubr.bf16.mxu0 %v160_v42  ;;  %v2893_v61 = vld [vmem:[#allocation5 + $0x1d8] sm:$0xff]   ;;  %v2896_v0 = vld [vmem:[#allocation5 + $0x150] sm:$0xff]   ;;  %v2900_v4 = vld [vmem:[#allocation5 + $0x148] sm:$0xff]  }
  0x3d   :  { %2550 = vmatpush3.bf16.msra.mxu0 %v2862_v18  ;;  %1798 = vmatprep.mubr.bf16.mxu1 %v162_v45  ;;  %v2894_v62 = vld [vmem:[#allocation5 + $0x118] sm:$0xff]   ;;  %v2897_v1 = vld [vmem:[#allocation5 + $0x1d0] sm:$0xff]   ;;  %v2901_v5 = vld [vmem:[#allocation5 + $0x1c8] sm:$0xff]  }
  0x3e   :  { %2572 = vmatpush3.bf16.msra.mxu1 %v2863_v19  ;;  %2551 = vmatprep.subr.bf16.mxu0 %v2864_v20  ;;  %v2895_v63 = vld [vmem:[#allocation5 + $0x198] sm:$0xff]   ;;  %v2898_v2 = vld [vmem:[#allocation5 + $0x110] sm:$0xff]   ;;  %v2902_v6 = vld [vmem:[#allocation5 + $0x108] sm:$0xff]  }
  0x3f   :  { %2573 = vmatprep.subr.bf16.mxu1 %v2865_v21  ;;  %v2899_v3 = vld [vmem:[#allocation5 + $0x190] sm:$0xff]   ;;  %v2903_v7 = vld [vmem:[#allocation5 + $0x188] sm:$0xff]   ;;  %v2904_v8 = vld [vmem:[#allocation5 + $0x140] sm:$0xff]  }
  0x40   :  { %v2905_v9 = vld [vmem:[#allocation5 + $0x1c0] sm:$0xff]   ;;  %v65_v12 = vld [vmem:[#allocation2 + $0x10] sm:$0xff]  ;;  %v66_v16 = vld [vmem:[#allocation2 + $0x18] sm:$0xff] }
  0x41   :  { %2552 = vmatpush3.bf16.msra.mxu0 %v2866_v22  ;;  %v2906_v10 = vld [vmem:[#allocation5 + $0x100] sm:$0xff]   ;;  %v77_v13 = vld [vmem:[#allocation2 + $0x70] sm:$0xff]  ;;  %v78_v17 = vld [vmem:[#allocation2 + $0x78] sm:$0xff] }
  0x42   :  { %2574 = vmatpush3.bf16.msra.mxu1 %v2867_v23  ;;  %2553 = vmatprep.subr.bf16.mxu0 %v2868_v24  ;;  %v2907_v11 = vld [vmem:[#allocation5 + $0x180] sm:$0xff]   ;;  %v115_v14 = vcombine.low %v65_v12, %v77_v13  ;;  %v116_v15 = vcombine.high %v65_v12, %v77_v13  ;;  %v117_v18 = vcombine.low %v66_v16, %v78_v17  ;;  %v2908_v20 = vld [vmem:[#allocation5 + $0x278] sm:$0xff]   ;;  %v2916_v32 = vld [vmem:[#allocation5 + $0x268] sm:$0xff]  }
  0x43   :  { %2575 = vmatprep.subr.bf16.mxu1 %v2869_v25  ;;  %v118_v19 = vcombine.high %v66_v16, %v78_v17  ;;  %v2909_v23 = vld [vmem:[#allocation5 + $0x2f8] sm:$0xff]   ;;  %v2917_v33 = vld [vmem:[#allocation5 + $0x2e8] sm:$0xff]   ;;  %v2920_v36 = vld [vmem:[#allocation5 + $0x260] sm:$0xff]  }
  0x44   :  { %v163_v21 = vpack.c.bf16 %v115_v14, %v115_v14  ;;  %v164_v22 = vpack.c.bf16 %v116_v15, %v116_v15  ;;  %v165_v24 = vpack.c.bf16 %v117_v18, %v117_v18  ;;  %v2918_v34 = vld [vmem:[#allocation5 + $0x228] sm:$0xff]   ;;  %v2921_v37 = vld [vmem:[#allocation5 + $0x2e0] sm:$0xff]   ;;  %v2926_v42 = vld [vmem:[#allocation5 + $0x218] sm:$0xff]  }
  0x45   :  { %2554 = vmatpush3.bf16.msra.mxu0 %v2870_v26  ;;  %v166_v25 = vpack.c.bf16 %v118_v19, %v118_v19  ;;  %v2910_v26 = vld [vmem:[#allocation5 + $0x238] sm:$0xff]   ;;  %v2919_v35 = vld [vmem:[#allocation5 + $0x2a8] sm:$0xff]   ;;  %v2922_v38 = vld [vmem:[#allocation5 + $0x220] sm:$0xff]  }
  0x46   :  { %2576 = vmatpush3.bf16.msra.mxu1 %v2871_v27  ;;  %2555 = vmatprep.subr.bf16.mxu0 %v2872_v28  ;;  %v2911_v27 = vld [vmem:[#allocation5 + $0x2b8] sm:$0xff]   ;;  %v2912_v28 = vld [vmem:[#allocation5 + $0x270] sm:$0xff]   ;;  %v2923_v39 = vld [vmem:[#allocation5 + $0x2a0] sm:$0xff]  }
  0x47   :  { %2577 = vmatprep.subr.bf16.mxu1 %v2873_v29  ;;  %v2913_v29 = vld [vmem:[#allocation5 + $0x2f0] sm:$0xff]   ;;  %v2948_v12 = vld [vmem:[#allocation5 + $0x368] sm:$0xff]   ;;  %v2952_v16 = vld [vmem:[#allocation5 + $0x360] sm:$0xff]  }
  0x48   :  { %v2929_v45 = vld [vmem:[#allocation5 + $0x2d0] sm:$0xff]   ;;  %v2949_v13 = vld [vmem:[#allocation5 + $0x3e8] sm:$0xff]   ;;  %v2953_v17 = vld [vmem:[#allocation5 + $0x3e0] sm:$0xff]  }
  0x49   :  { %2556 = vmatpush3.bf16.msra.mxu0 %v2874_v30  ;;  %v2914_v30 = vld [vmem:[#allocation5 + $0x230] sm:$0xff]   ;;  %v2950_v14 = vld [vmem:[#allocation5 + $0x328] sm:$0xff]   ;;  %v2954_v18 = vld [vmem:[#allocation5 + $0x320] sm:$0xff]  }
  0x4a   :  { %2578 = vmatpush3.bf16.msra.mxu1 %v2875_v31  ;;  %2585 = vmatprep.subr.bf16.mxu0 %v2876_v40  ;;  %v2915_v31 = vld [vmem:[#allocation5 + $0x2b0] sm:$0xff]   ;;  %v2924_v40 = vld [vmem:[#allocation5 + $0x258] sm:$0xff]   ;;  %v2951_v15 = vld [vmem:[#allocation5 + $0x3a8] sm:$0xff]  }
  0x4b   :  { %2607 = vmatprep.subr.bf16.mxu1 %v2877_v43  ;;  %v2927_v43 = vld [vmem:[#allocation5 + $0x298] sm:$0xff]   ;;  %v2955_v19 = vld [vmem:[#allocation5 + $0x3a0] sm:$0xff]  }
  0x4c   :  { %1759 = vmatmul.mubr.bf16.vlgmr.msra.gmra.mxu0 %v159_v41  ;;  %v2925_v41 = vld [vmem:[#allocation5 + $0x2d8] sm:$0xff]  }
  0x4d   :  { %1799 = vmatmul.mubr.bf16.vlgmr.msra.gmra.mxu1 %v161_v44  ;;  %2586 = vmatpush3.bf16.msra.mxu0 %v2878_v46  ;;  %v2928_v44 = vld [vmem:[#allocation5 + $0x250] sm:$0xff]  }
  0x4e   :  { %2608 = vmatpush3.bf16.msra.mxu1 %v2879_v47  ;;  %2587 = vmatprep.subr.bf16.mxu0 %v2880_v48  ;;  %v2930_v46 = vld [vmem:[#allocation5 + $0x210] sm:$0xff]   ;;  %v2932_v48 = vld [vmem:[#allocation5 + $0x248] sm:$0xff]  }
  0x4f   :  { %2609 = vmatprep.subr.bf16.mxu1 %v2881_v49  ;;  %1838 = vmatprep.mubr.bf16.mxu0 %v164_v22  ;;  %v2931_v47 = vld [vmem:[#allocation5 + $0x290] sm:$0xff]   ;;  %v2933_v49 = vld [vmem:[#allocation5 + $0x2c8] sm:$0xff]   ;;  %v2958_v22 = vld [vmem:[#allocation5 + $0x318] sm:$0xff]  }
  0x50   :  { %1878 = vmatprep.mubr.bf16.mxu1 %v166_v25  ;;  %v2961_v25 = vld [vmem:[#allocation5 + $0x3d0] sm:$0xff]  }
  0x51   :  { %2588 = vmatpush3.bf16.msra.mxu0 %v2882_v50  ;;  %v2934_v50 = vld [vmem:[#allocation5 + $0x208] sm:$0xff]  }
  0x52   :  { %2610 = vmatpush3.bf16.msra.mxu1 %v2883_v51  ;;  %2589 = vmatprep.subr.bf16.mxu0 %v2884_v52  ;;  %v2935_v51 = vld [vmem:[#allocation5 + $0x288] sm:$0xff]   ;;  %v2936_v52 = vld [vmem:[#allocation5 + $0x240] sm:$0xff]  }
  0x53   :  { %2611 = vmatprep.subr.bf16.mxu1 %v2885_v53  ;;  %v2937_v53 = vld [vmem:[#allocation5 + $0x2c0] sm:$0xff]  }
  0x55   :  { %2590 = vmatpush3.bf16.msra.mxu0 %v2886_v54  ;;  %v2938_v54 = vld [vmem:[#allocation5 + $0x200] sm:$0xff]  }
  0x56   :  { %2612 = vmatpush3.bf16.msra.mxu1 %v2887_v55  ;;  %2591 = vmatprep.subr.bf16.mxu0 %v2888_v56  ;;  %v2939_v55 = vld [vmem:[#allocation5 + $0x280] sm:$0xff]  }
  0x57   :  { %2613 = vmatprep.subr.bf16.mxu1 %v2889_v57  ;;  %v67_v56 = vld [vmem:[#allocation2 + $0x20] sm:$0xff] }
  0x58   :  { %v79_v57 = vld [vmem:[#allocation2 + $0x80] sm:$0xff] }
  0x59   :  { %2592 = vmatpush3.bf16.msra.mxu0 %v2890_v58  ;;  %v68_v58 = vld [vmem:[#allocation2 + $0x28] sm:$0xff] }
  0x5a   :  { %2614 = vmatpush3.bf16.msra.mxu1 %v2891_v59  ;;  %2593 = vmatprep.subr.bf16.mxu0 %v2892_v60  ;;  %v80_v59 = vld [vmem:[#allocation2 + $0x88] sm:$0xff]  ;;  %v119_v60 = vcombine.low %v67_v56, %v79_v57 }
  0x5b   :  { %2615 = vmatprep.subr.bf16.mxu1 %v2893_v61  ;;  %v120_v61 = vcombine.high %v67_v56, %v79_v57  ;;  %v2980_v56 = vld [vmem:[#allocation5 + $0x468] sm:$0xff]  }
  0x5c   :  { %v2981_v57 = vld [vmem:[#allocation5 + $0x4e8] sm:$0xff]  }
  0x5d   :  { %2594 = vmatpush3.bf16.msra.mxu0 %v2894_v62  ;;  %v121_v62 = vcombine.low %v68_v58, %v80_v59 }
  0x5e   :  { %2616 = vmatpush3.bf16.msra.mxu1 %v2895_v63  ;;  %2595 = vmatprep.subr.bf16.mxu0 %v2896_v0  ;;  %v122_v63 = vcombine.high %v68_v58, %v80_v59  ;;  %v2940_v0 = vld [vmem:[#allocation5 + $0x378] sm:$0xff]   ;;  %v2982_v58 = vld [vmem:[#allocation5 + $0x428] sm:$0xff]  }
  0x5f   :  { %2617 = vmatprep.subr.bf16.mxu1 %v2897_v1  ;;  %v2941_v1 = vld [vmem:[#allocation5 + $0x3f8] sm:$0xff]   ;;  %v2983_v59 = vld [vmem:[#allocation5 + $0x4a8] sm:$0xff]  }
  0x61   :  { %2596 = vmatpush3.bf16.msra.mxu0 %v2898_v2  ;;  %v167_v2 = vpack.c.bf16 %v119_v60, %v119_v60  ;;  %v2984_v60 = vld [vmem:[#allocation5 + $0x460] sm:$0xff]  }
  0x62   :  { %2618 = vmatpush3.bf16.msra.mxu1 %v2899_v3  ;;  %2597 = vmatprep.subr.bf16.mxu0 %v2900_v4  ;;  %v168_v3 = vpack.c.bf16 %v120_v61, %v120_v61  ;;  %v169_v4 = vpack.c.bf16 %v121_v62, %v121_v62  ;;  %v2985_v61 = vld [vmem:[#allocation5 + $0x4e0] sm:$0xff]  }
  0x63   :  { %2619 = vmatprep.subr.bf16.mxu1 %v2901_v5  ;;  %v170_v5 = vpack.c.bf16 %v122_v63, %v122_v63  ;;  %v2986_v62 = vld [vmem:[#allocation5 + $0x420] sm:$0xff]  }
  0x64   :  { %v2987_v63 = vld [vmem:[#allocation5 + $0x4a0] sm:$0xff]  }
  0x65   :  { %2598 = vmatpush3.bf16.msra.mxu0 %v2902_v6  ;;  %v2942_v6 = vld [vmem:[#allocation5 + $0x338] sm:$0xff]  }
  0x66   :  { %2620 = vmatpush3.bf16.msra.mxu1 %v2903_v7  ;;  %2599 = vmatprep.subr.bf16.mxu0 %v2904_v8  ;;  %v2943_v7 = vld [vmem:[#allocation5 + $0x3b8] sm:$0xff]   ;;  %v2944_v8 = vld [vmem:[#allocation5 + $0x370] sm:$0xff]  }
  0x67   :  { %2621 = vmatprep.subr.bf16.mxu1 %v2905_v9  ;;  %v2945_v9 = vld [vmem:[#allocation5 + $0x3f0] sm:$0xff]  }
  0x69   :  { %2600 = vmatpush3.bf16.msra.mxu0 %v2906_v10  ;;  %v2946_v10 = vld [vmem:[#allocation5 + $0x330] sm:$0xff]  }
  0x6a   :  { %2622 = vmatpush3.bf16.msra.mxu1 %v2907_v11  ;;  %2629 = vmatprep.subr.bf16.mxu0 %v2908_v20  ;;  %v2947_v11 = vld [vmem:[#allocation5 + $0x3b0] sm:$0xff]   ;;  %v2956_v20 = vld [vmem:[#allocation5 + $0x358] sm:$0xff]  }
  0x6b   :  { %2651 = vmatprep.subr.bf16.mxu1 %v2909_v23  ;;  %v2959_v23 = vld [vmem:[#allocation5 + $0x398] sm:$0xff]  }
  0x6c   :  { %1839 = vmatmul.mubr.bf16.vlgmr.msra.gmra.mxu0 %v163_v21  ;;  %v2957_v21 = vld [vmem:[#allocation5 + $0x3d8] sm:$0xff]  }
  0x6d   :  { %1879 = vmatmul.mubr.bf16.vlgmr.msra.gmra.mxu1 %v165_v24  ;;  %2630 = vmatpush3.bf16.msra.mxu0 %v2910_v26  ;;  %v2960_v24 = vld [vmem:[#allocation5 + $0x350] sm:$0xff]  }
  0x6e   :  { %2652 = vmatpush3.bf16.msra.mxu1 %v2911_v27  ;;  %2631 = vmatprep.subr.bf16.mxu0 %v2912_v28  ;;  %v2962_v26 = vld [vmem:[#allocation5 + $0x310] sm:$0xff]   ;;  %v2964_v28 = vld [vmem:[#allocation5 + $0x348] sm:$0xff]  }
  0x6f   :  { %2653 = vmatprep.subr.bf16.mxu1 %v2913_v29  ;;  %1918 = vmatprep.mubr.bf16.mxu0 %v168_v3  ;;  %v2963_v27 = vld [vmem:[#allocation5 + $0x390] sm:$0xff]   ;;  %v2965_v29 = vld [vmem:[#allocation5 + $0x3c8] sm:$0xff]   ;;  %v2991_v3 = vld [vmem:[#allocation5 + $0x498] sm:$0xff]  }
  0x70   :  { %1958 = vmatprep.mubr.bf16.mxu1 %v170_v5  ;;  %v2993_v5 = vld [vmem:[#allocation5 + $0x4d0] sm:$0xff]  }
  0x71   :  { %2632 = vmatpush3.bf16.msra.mxu0 %v2914_v30  ;;  %v2966_v30 = vld [vmem:[#allocation5 + $0x308] sm:$0xff]  }
  0x72   :  { %2654 = vmatpush3.bf16.msra.mxu1 %v2915_v31  ;;  %2633 = vmatprep.subr.bf16.mxu0 %v2916_v32  ;;  %v2967_v31 = vld [vmem:[#allocation5 + $0x388] sm:$0xff]   ;;  %v2968_v32 = vld [vmem:[#allocation5 + $0x340] sm:$0xff]  }
  0x73   :  { %2655 = vmatprep.subr.bf16.mxu1 %v2917_v33  ;;  %v2969_v33 = vld [vmem:[#allocation5 + $0x3c0] sm:$0xff]  }
  0x75   :  { %2634 = vmatpush3.bf16.msra.mxu0 %v2918_v34  ;;  %v2970_v34 = vld [vmem:[#allocation5 + $0x300] sm:$0xff]  }
  0x76   :  { %2656 = vmatpush3.bf16.msra.mxu1 %v2919_v35  ;;  %2635 = vmatprep.subr.bf16.mxu0 %v2920_v36  ;;  %v2971_v35 = vld [vmem:[#allocation5 + $0x380] sm:$0xff]   ;;  %v69_v36 = vld [vmem:[#allocation2 + $0x30] sm:$0xff] }
  0x77   :  { %2657 = vmatprep.subr.bf16.mxu1 %v2921_v37  ;;  %v81_v37 = vld [vmem:[#allocation2 + $0x90] sm:$0xff] }
  0x79   :  { %2636 = vmatpush3.bf16.msra.mxu0 %v2922_v38  ;;  %v70_v38 = vld [vmem:[#allocation2 + $0x38] sm:$0xff] }
  0x7a   :  { %2658 = vmatpush3.bf16.msra.mxu1 %v2923_v39  ;;  %2637 = vmatprep.subr.bf16.mxu0 %v2924_v40  ;;  %v123_v39 = vcombine.low %v69_v36, %v81_v37  ;;  %v124_v40 = vcombine.high %v69_v36, %v81_v37  ;;  %v3012_v36 = vld [vmem:[#allocation5 + $0x568] sm:$0xff]  }
  0x7b   :  { %2659 = vmatprep.subr.bf16.mxu1 %v2925_v41  ;;  %v82_v41 = vld [vmem:[#allocation2 + $0x98] sm:$0xff]  ;;  %v3013_v37 = vld [vmem:[#allocation5 + $0x5e8] sm:$0xff]  }
  0x7d   :  { %2638 = vmatpush3.bf16.msra.mxu0 %v2926_v42  ;;  %v125_v42 = vcombine.low %v70_v38, %v82_v41 }
  0x7e   :  { %2660 = vmatpush3.bf16.msra.mxu1 %v2927_v43  ;;  %2639 = vmatprep.subr.bf16.mxu0 %v2928_v44  ;;  %v126_v43 = vcombine.high %v70_v38, %v82_v41  ;;  %v2972_v44 = vld [vmem:[#allocation5 + $0x478] sm:$0xff]   ;;  %v3014_v38 = vld [vmem:[#allocation5 + $0x528] sm:$0xff]   ;;  %v3017_v41 = vld [vmem:[#allocation5 + $0x5e0] sm:$0xff]  }
  0x7f   :  { %2661 = vmatprep.subr.bf16.mxu1 %v2929_v45  ;;  %v171_v45 = vpack.c.bf16 %v123_v39, %v123_v39  ;;  %v3015_v39 = vld [vmem:[#allocation5 + $0x5a8] sm:$0xff]  }
  0x81   :  { %2640 = vmatpush3.bf16.msra.mxu0 %v2930_v46  ;;  %v172_v46 = vpack.c.bf16 %v124_v40, %v124_v40  ;;  %v3016_v40 = vld [vmem:[#allocation5 + $0x560] sm:$0xff]  }
  0x82   :  { %2662 = vmatpush3.bf16.msra.mxu1 %v2931_v47  ;;  %2641 = vmatprep.subr.bf16.mxu0 %v2932_v48  ;;  %v2973_v47 = vld [vmem:[#allocation5 + $0x4f8] sm:$0xff]   ;;  %v173_v48 = vpack.c.bf16 %v125_v42, %v125_v42  ;;  %v3018_v42 = vld [vmem:[#allocation5 + $0x520] sm:$0xff]  }
  0x83   :  { %2663 = vmatprep.subr.bf16.mxu1 %v2933_v49  ;;  %v174_v49 = vpack.c.bf16 %v126_v43, %v126_v43  ;;  %v3019_v43 = vld [vmem:[#allocation5 + $0x5a0] sm:$0xff]  }
  0x85   :  { %2642 = vmatpush3.bf16.msra.mxu0 %v2934_v50  ;;  %v2974_v50 = vld [vmem:[#allocation5 + $0x438] sm:$0xff]  }
  0x86   :  { %2664 = vmatpush3.bf16.msra.mxu1 %v2935_v51  ;;  %2643 = vmatprep.subr.bf16.mxu0 %v2936_v52  ;;  %v2975_v51 = vld [vmem:[#allocation5 + $0x4b8] sm:$0xff]   ;;  %v2976_v52 = vld [vmem:[#allocation5 + $0x470] sm:$0xff]  }
  0x87   :  { %2665 = vmatprep.subr.bf16.mxu1 %v2937_v53  ;;  %v2977_v53 = vld [vmem:[#allocation5 + $0x4f0] sm:$0xff]  }
  0x89   :  { %2644 = vmatpush3.bf16.msra.mxu0 %v2938_v54  ;;  %v2978_v54 = vld [vmem:[#allocation5 + $0x430] sm:$0xff]  }
  0x8a   :  { %2666 = vmatpush3.bf16.msra.mxu1 %v2939_v55  ;;  %2673 = vmatprep.subr.bf16.mxu0 %v2940_v0  ;;  %v2979_v55 = vld [vmem:[#allocation5 + $0x4b0] sm:$0xff]   ;;  %v2988_v0 = vld [vmem:[#allocation5 + $0x458] sm:$0xff]  }
  0x8b   :  { %2695 = vmatprep.subr.bf16.mxu1 %v2941_v1  ;;  %v2989_v1 = vld [vmem:[#allocation5 + $0x4d8] sm:$0xff]  }
  0x8c   :  { %1919 = vmatmul.mubr.bf16.vlgmr.msra.gmra.mxu0 %v167_v2  ;;  %v2990_v2 = vld [vmem:[#allocation5 + $0x418] sm:$0xff]  }
  0x8d   :  { %1959 = vmatmul.mubr.bf16.vlgmr.msra.gmra.mxu1 %v169_v4  ;;  %2674 = vmatpush3.bf16.msra.mxu0 %v2942_v6  ;;  %v2992_v4 = vld [vmem:[#allocation5 + $0x450] sm:$0xff]  }
  0x8e   :  { %2696 = vmatpush3.bf16.msra.mxu1 %v2943_v7  ;;  %2675 = vmatprep.subr.bf16.mxu0 %v2944_v8  ;;  %v2994_v6 = vld [vmem:[#allocation5 + $0x410] sm:$0xff]   ;;  %v2996_v8 = vld [vmem:[#allocation5 + $0x448] sm:$0xff]  }
  0x8f   :  { %2697 = vmatprep.subr.bf16.mxu1 %v2945_v9  ;;  %1998 = vmatprep.mubr.bf16.mxu0 %v172_v46  ;;  %v2995_v7 = vld [vmem:[#allocation5 + $0x490] sm:$0xff]   ;;  %v2997_v9 = vld [vmem:[#allocation5 + $0x4c8] sm:$0xff]   ;;  %v3022_v46 = vld [vmem:[#allocation5 + $0x518] sm:$0xff]  }
  0x90   :  { %2038 = vmatprep.mubr.bf16.mxu1 %v174_v49  ;;  %v3025_v49 = vld [vmem:[#allocation5 + $0x5d0] sm:$0xff]  }
  0x91   :  { %2676 = vmatpush3.bf16.msra.mxu0 %v2946_v10  ;;  %v2998_v10 = vld [vmem:[#allocation5 + $0x408] sm:$0xff]  }
  0x92   :  { %2698 = vmatpush3.bf16.msra.mxu1 %v2947_v11  ;;  %2677 = vmatprep.subr.bf16.mxu0 %v2948_v12  ;;  %v2999_v11 = vld [vmem:[#allocation5 + $0x488] sm:$0xff]   ;;  %v3000_v12 = vld [vmem:[#allocation5 + $0x440] sm:$0xff]  }
  0x93   :  { %2699 = vmatprep.subr.bf16.mxu1 %v2949_v13  ;;  %v3001_v13 = vld [vmem:[#allocation5 + $0x4c0] sm:$0xff]  }
  0x95   :  { %2678 = vmatpush3.bf16.msra.mxu0 %v2950_v14  ;;  %v3002_v14 = vld [vmem:[#allocation5 + $0x400] sm:$0xff]  }
  0x96   :  { %2700 = vmatpush3.bf16.msra.mxu1 %v2951_v15  ;;  %2679 = vmatprep.subr.bf16.mxu0 %v2952_v16  ;;  %v3003_v15 = vld [vmem:[#allocation5 + $0x480] sm:$0xff]  }
  0x97   :  { %2701 = vmatprep.subr.bf16.mxu1 %v2953_v17  ;;  %v71_v16 = vld [vmem:[#allocation2 + $0x40] sm:$0xff] }
  0x98   :  { %v83_v17 = vld [vmem:[#allocation2 + $0xa0] sm:$0xff] }
  0x99   :  { %2680 = vmatpush3.bf16.msra.mxu0 %v2954_v18  ;;  %v127_v18 = vcombine.low %v71_v16, %v83_v17 }
  0x9a   :  { %2702 = vmatpush3.bf16.msra.mxu1 %v2955_v19  ;;  %2681 = vmatprep.subr.bf16.mxu0 %v2956_v20  ;;  %v128_v19 = vcombine.high %v71_v16, %v83_v17  ;;  %v72_v20 = vld [vmem:[#allocation2 + $0x48] sm:$0xff] }
  0x9b   :  { %2703 = vmatprep.subr.bf16.mxu1 %v2957_v21  ;;  %v84_v21 = vld [vmem:[#allocation2 + $0xa8] sm:$0xff] }
  0x9d   :  { %2682 = vmatpush3.bf16.msra.mxu0 %v2958_v22  ;;  %v129_v22 = vcombine.low %v72_v20, %v84_v21 }
  0x9e   :  { %2704 = vmatpush3.bf16.msra.mxu1 %v2959_v23  ;;  %2683 = vmatprep.subr.bf16.mxu0 %v2960_v24  ;;  %v130_v23 = vcombine.high %v72_v20, %v84_v21  ;;  %v3004_v24 = vld [vmem:[#allocation5 + $0x578] sm:$0xff]  }
  0x9f   :  { %2705 = vmatprep.subr.bf16.mxu1 %v2961_v25  ;;  %v175_v25 = vpack.c.bf16 %v127_v18, %v127_v18  ;;  %v3036_v21 = vld [vmem:[#allocation7 + $0x38] sm:$0xff]  }
  0xa1   :  { %2684 = vmatpush3.bf16.msra.mxu0 %v2962_v26  ;;  %v176_v26 = vpack.c.bf16 %v128_v19, %v128_v19 }
  0xa2   :  { %2706 = vmatpush3.bf16.msra.mxu1 %v2963_v27  ;;  %2685 = vmatprep.subr.bf16.mxu0 %v2964_v28  ;;  %v3005_v27 = vld [vmem:[#allocation5 + $0x5f8] sm:$0xff]   ;;  %v177_v28 = vpack.c.bf16 %v129_v22, %v129_v22  ;;  %v3137_v22 = vmov 0.0  }
  0xa3   :  { %2707 = vmatprep.subr.bf16.mxu1 %v2965_v29  ;;  %v178_v29 = vpack.c.bf16 %v130_v23, %v130_v23  ;;  %v3037_v23 = vld [vmem:[#allocation7 + $0x30] sm:$0xff]  }
  0xa5   :  { %2686 = vmatpush3.bf16.msra.mxu0 %v2966_v30  ;;  %v3006_v30 = vld [vmem:[#allocation5 + $0x538] sm:$0xff]  }
  0xa6   :  { %2708 = vmatpush3.bf16.msra.mxu1 %v2967_v31  ;;  %2687 = vmatprep.subr.bf16.mxu0 %v2968_v32  ;;  %v3007_v31 = vld [vmem:[#allocation5 + $0x5b8] sm:$0xff]   ;;  %v3008_v32 = vld [vmem:[#allocation5 + $0x570] sm:$0xff]  }
  0xa7   :  { %2709 = vmatprep.subr.bf16.mxu1 %v2969_v33  ;;  %v3009_v33 = vld [vmem:[#allocation5 + $0x5f0] sm:$0xff]  }
  0xa9   :  { %2688 = vmatpush3.bf16.msra.mxu0 %v2970_v34  ;;  %v3010_v34 = vld [vmem:[#allocation5 + $0x530] sm:$0xff]  }
  0xaa   :  { %2710 = vmatpush3.bf16.msra.mxu1 %v2971_v35  ;;  %2717 = vmatprep.subr.bf16.mxu0 %v2972_v44  ;;  %v3011_v35 = vld [vmem:[#allocation5 + $0x5b0] sm:$0xff]   ;;  %v3020_v44 = vld [vmem:[#allocation5 + $0x558] sm:$0xff]  }
  0xab   :  { %2739 = vmatprep.subr.bf16.mxu1 %v2973_v47  ;;  %v3023_v47 = vld [vmem:[#allocation5 + $0x598] sm:$0xff]  }
  0xac   :  { %1999 = vmatmul.mubr.bf16.vlgmr.msra.gmra.mxu0 %v171_v45  ;;  %v3021_v45 = vld [vmem:[#allocation5 + $0x5d8] sm:$0xff]  }
  0xad   :  { %2039 = vmatmul.mubr.bf16.vlgmr.msra.gmra.mxu1 %v173_v48  ;;  %2718 = vmatpush3.bf16.msra.mxu0 %v2974_v50  ;;  %v3024_v48 = vld [vmem:[#allocation5 + $0x550] sm:$0xff]  }
  0xae   :  { %2740 = vmatpush3.bf16.msra.mxu1 %v2975_v51  ;;  %2719 = vmatprep.subr.bf16.mxu0 %v2976_v52  ;;  %v3026_v50 = vld [vmem:[#allocation5 + $0x510] sm:$0xff]   ;;  %v3028_v52 = vld [vmem:[#allocation5 + $0x548] sm:$0xff]  }
  0xaf   :  { %2741 = vmatprep.subr.bf16.mxu1 %v2977_v53  ;;  %2078 = vmatprep.mubr.bf16.mxu0 %v176_v26  ;;  %v3027_v51 = vld [vmem:[#allocation5 + $0x590] sm:$0xff]   ;;  %v3029_v53 = vld [vmem:[#allocation5 + $0x5c8] sm:$0xff]   ;;  %v3040_v26 = vld [vmem:[#allocation7 + $0x18] sm:$0xff]  }
  0xb0   :  { %2118 = vmatprep.mubr.bf16.mxu1 %v178_v29 }
  0xb1   :  { %2720 = vmatpush3.bf16.msra.mxu0 %v2978_v54  ;;  %v3030_v54 = vld [vmem:[#allocation5 + $0x508] sm:$0xff]  }
  0xb2   :  { %2742 = vmatpush3.bf16.msra.mxu1 %v2979_v55  ;;  %2721 = vmatprep.subr.bf16.mxu0 %v2980_v56  ;;  %v3031_v55 = vld [vmem:[#allocation5 + $0x588] sm:$0xff]   ;;  %v3032_v56 = vld [vmem:[#allocation5 + $0x540] sm:$0xff]  }
  0xb3   :  { %2743 = vmatprep.subr.bf16.mxu1 %v2981_v57  ;;  %v3033_v57 = vld [vmem:[#allocation5 + $0x5c0] sm:$0xff]  }
  0xb5   :  { %2722 = vmatpush3.bf16.msra.mxu0 %v2982_v58  ;;  %v3034_v58 = vld [vmem:[#allocation5 + $0x500] sm:$0xff]  }
  0xb6   :  { %2744 = vmatpush3.bf16.msra.mxu1 %v2983_v59  ;;  %2723 = vmatprep.subr.bf16.mxu0 %v2984_v60  ;;  %v3035_v59 = vld [vmem:[#allocation5 + $0x580] sm:$0xff]   ;;  %v73_v60 = vld [vmem:[#allocation2 + $0x50] sm:$0xff] }
  0xb7   :  { %2745 = vmatprep.subr.bf16.mxu1 %v2985_v61  ;;  %v85_v61 = vld [vmem:[#allocation2 + $0xb0] sm:$0xff] }
  0xb9   :  { %2724 = vmatpush3.bf16.msra.mxu0 %v2986_v62  ;;  %v74_v62 = vld [vmem:[#allocation2 + $0x58] sm:$0xff] }
  0xba   :  { %2746 = vmatpush3.bf16.msra.mxu1 %v2987_v63  ;;  %2725 = vmatprep.subr.bf16.mxu0 %v2988_v0  ;;  %v86_v63 = vld [vmem:[#allocation2 + $0xb8] sm:$0xff]  ;;  %v131_v0 = vcombine.low %v73_v60, %v85_v61 }
  0xbb   :  { %2747 = vmatprep.subr.bf16.mxu1 %v2989_v1  ;;  %v132_v1 = vcombine.high %v73_v60, %v85_v61 }
  0xbd   :  { %2726 = vmatpush3.bf16.msra.mxu0 %v2990_v2  ;;  %v133_v2 = vcombine.low %v74_v62, %v86_v63 }
  0xbe   :  { %2748 = vmatpush3.bf16.msra.mxu1 %v2991_v3  ;;  %2727 = vmatprep.subr.bf16.mxu0 %v2992_v4  ;;  %v134_v3 = vcombine.high %v74_v62, %v86_v63  ;;  %v179_v4 = vpack.c.bf16 %v131_v0, %v131_v0 }
  0xbf   :  { %2749 = vmatprep.subr.bf16.mxu1 %v2993_v5  ;;  %v180_v5 = vpack.c.bf16 %v132_v1, %v132_v1 }
  0xc1   :  { %2728 = vmatpush3.bf16.msra.mxu0 %v2994_v6  ;;  %v181_v6 = vpack.c.bf16 %v133_v2, %v133_v2 }
  0xc2   :  { %2750 = vmatpush3.bf16.msra.mxu1 %v2995_v7  ;;  %2729 = vmatprep.subr.bf16.mxu0 %v2996_v8  ;;  %v182_v7 = vpack.c.bf16 %v134_v3, %v134_v3 }
  0xc3   :  { %2751 = vmatprep.subr.bf16.mxu1 %v2997_v9 }
  0xc5   :  { %2730 = vmatpush3.bf16.msra.mxu0 %v2998_v10  ;;  %v2339_v10 = vld [vmem:[%s3199_s2] ss:$0 sm:$0xff] }
  0xc6   :  { %2752 = vmatpush3.bf16.msra.mxu1 %v2999_v11  ;;  %2731 = vmatprep.subr.bf16.mxu0 %v3000_v12 }
  0xc7   :  { %2753 = vmatprep.subr.bf16.mxu1 %v3001_v13 }
  0xc9   :  { %2732 = vmatpush3.bf16.msra.mxu0 %v3002_v14 }
  0xca   :  { %2754 = vmatpush3.bf16.msra.mxu1 %v3003_v15  ;;  %2761 = vmatprep.subr.bf16.mxu0 %v3004_v24  ;;  %v3038_v24 = vld [vmem:[#allocation7 + $0x28] sm:$0xff]  }
  0xcb   :  { %2783 = vmatprep.subr.bf16.mxu1 %v3005_v27 }
  0xcc   :  { %2079 = vmatmul.mubr.bf16.vlgmr.msra.gmra.mxu0 %v175_v25  ;;  %v3039_v25 = vld [vmem:[#allocation7 + $0x20] sm:$0xff]  }
  0xcd   :  { %2119 = vmatmul.mubr.bf16.vlgmr.msra.gmra.mxu1 %v177_v28  ;;  %2762 = vmatpush3.bf16.msra.mxu0 %v3006_v30 }
  0xce   :  { %2784 = vmatpush3.bf16.msra.mxu1 %v3007_v31  ;;  %2763 = vmatprep.subr.bf16.mxu0 %v3008_v32 }
  0xcf   :  { %2785 = vmatprep.subr.bf16.mxu1 %v3009_v33  ;;  %2158 = vmatprep.mubr.bf16.mxu0 %v180_v5 }
  0xd0   :  { %2198 = vmatprep.mubr.bf16.mxu1 %v182_v7 }
  0xd1   :  { %2764 = vmatpush3.bf16.msra.mxu0 %v3010_v34 }
  0xd2   :  { %2786 = vmatpush3.bf16.msra.mxu1 %v3011_v35  ;;  %2765 = vmatprep.subr.bf16.mxu0 %v3012_v36 }
  0xd3   :  { %2787 = vmatprep.subr.bf16.mxu1 %v3013_v37  ;;  %v3041_v37 = vld [vmem:[#allocation7 + $0x10] sm:$0xff]  }
  0xd5   :  { %2766 = vmatpush3.bf16.msra.mxu0 %v3014_v38 }
  0xd6   :  { %2788 = vmatpush3.bf16.msra.mxu1 %v3015_v39  ;;  %2767 = vmatprep.subr.bf16.mxu0 %v3016_v40  ;;  %v3042_v40 = vld [vmem:[#allocation7 + $0x8] sm:$0xff]  }
  0xd7   :  { %2789 = vmatprep.subr.bf16.mxu1 %v3017_v41  ;;  %v3043_v41 = vld [vmem:[#allocation7] sm:$0xff]  }
  0xd9   :  { %2768 = vmatpush3.bf16.msra.mxu0 %v3018_v42 }
  0xda   :  { %2790 = vmatpush3.bf16.msra.mxu1 %v3019_v43  ;;  %2769 = vmatprep.subr.bf16.mxu0 %v3020_v44 }
  0xdb   :  { %2791 = vmatprep.subr.bf16.mxu1 %v3021_v45 }
  0xdd   :  { %2770 = vmatpush3.bf16.msra.mxu0 %v3022_v46 }
  0xde   :  { %2792 = vmatpush3.bf16.msra.mxu1 %v3023_v47  ;;  %2771 = vmatprep.subr.bf16.mxu0 %v3024_v48 }
  0xdf   :  { %2793 = vmatprep.subr.bf16.mxu1 %v3025_v49 }
  0xe1   :  { %2772 = vmatpush3.bf16.msra.mxu0 %v3026_v50 }
  0xe2   :  { %2794 = vmatpush3.bf16.msra.mxu1 %v3027_v51  ;;  %2773 = vmatprep.subr.bf16.mxu0 %v3028_v52 }
  0xe3   :  { %2795 = vmatprep.subr.bf16.mxu1 %v3029_v53 }
  0xe5   :  { %2774 = vmatpush3.bf16.msra.mxu0 %v3030_v54 }
  0xe6   :  { %2796 = vmatpush3.bf16.msra.mxu1 %v3031_v55  ;;  %2775 = vmatprep.subr.bf16.mxu0 %v3032_v56 }
  0xe7   :  { %2797 = vmatprep.subr.bf16.mxu1 %v3033_v57 }
  0xe9   :  { %2776 = vmatpush3.bf16.msra.mxu0 %v3034_v58 }
  0xea   :  { %2798 = vmatpush3.bf16.msra.mxu1 %v3035_v59  ;;  %2814 = vmatprep.subr.bf16.mxu0 %v3137_v22 }
  0xec   :  { %2159 = vmatmul.mubr.bf16.vlgmr.msra.gmra.mxu0 %v179_v4 }
  0xed   :  { %2199 = vmatmul.mubr.bf16.vlgmr.msra.gmra.mxu1 %v181_v6  ;;  %2815 = vmatpush3.bf16.msra.mxu0 %v3036_v21 }
  0xee   :  { %2816 = vmatprep.subr.bf16.mxu0 %v3137_v22  ;;  %2830 = vmatprep.mubr.msk.bf16.mxu0 %vm3138_vm0, %v3137_v22 }
  0xf1   :  { %2817 = vmatpush3.bf16.msra.mxu0 %v3037_v23 }
  0xf2   :  { %2818 = vmatprep.subr.bf16.mxu0 %v3137_v22 }
  0xf5   :  { %2819 = vmatpush3.bf16.msra.mxu0 %v3038_v24 }
  0xf6   :  { %2820 = vmatprep.subr.bf16.mxu0 %v3137_v22 }
  0xf9   :  { %2821 = vmatpush3.bf16.msra.mxu0 %v3039_v25 }
  0xfa   :  { %2822 = vmatprep.subr.bf16.mxu0 %v3137_v22 }
  0xfd   :  { %2823 = vmatpush3.bf16.msra.mxu0 %v3040_v26 }
  0xfe   :  { %2824 = vmatprep.subr.bf16.mxu0 %v3137_v22 }
 0x101   :  { %2825 = vmatpush3.bf16.msra.mxu0 %v3041_v37 }
 0x102   :  { %2826 = vmatprep.subr.bf16.mxu0 %v3137_v22 }
 0x105   :  { %2827 = vmatpush3.bf16.msra.mxu0 %v3042_v40 }
 0x106   :  { %2828 = vmatprep.subr.bf16.mxu0 %v3137_v22 }
 0x109   :  { %2829 = vmatpush3.bf16.msra.mxu0 %v3043_v41 }
 0x10c   :  { %v2557_v8 = vpop.f32.mrf.mxu0 }
 0x10d   :  { %v2579_v9 = vpop.f32.mrf.mxu1 }
 0x10e   :  { %v2558_v11 = vpop.f32.mrf.mxu0 }
 0x10f   :  { %v2559_v12 = vadd.f32 %v2558_v11, %v2557_v8  ;;  %v2580_v13 = vpop.f32.mrf.mxu1 }
 0x110   :  { %v2581_v14 = vadd.f32 %v2580_v13, %v2579_v9  ;;  %v2560_v15 = vpop.f32.mrf.mxu0 }
 0x111   :  { %v1761_v16 = vadd.f32 %v2559_v12, %v2339_v10  ;;  %v2582_v17 = vpop.f32.mrf.mxu1 }
 0x112   :  { %v2561_v18 = vpop.f32.mrf.mxu0 }
 0x113   :  { %v1801_v19 = vadd.f32 %v2581_v14, %v1761_v16  ;;  %v2583_v20 = vpop.f32.mrf.mxu1 }
 0x12c   :  { %v2601_v27 = vpop.f32.mrf.mxu0 }
 0x12d   :  { %v2623_v28 = vpop.f32.mrf.mxu1 }
 0x12e   :  { %v2602_v29 = vpop.f32.mrf.mxu0 }
 0x12f   :  { %v2603_v30 = vadd.f32 %v2602_v29, %v2601_v27  ;;  %v2624_v31 = vpop.f32.mrf.mxu1 }
 0x130   :  { %v2625_v32 = vadd.f32 %v2624_v31, %v2623_v28  ;;  %v2604_v33 = vpop.f32.mrf.mxu0  ;;  %v2532_v28 = vld [vmem:[%s3201_s4] ss:$0 sm:$0xff] }
 0x131   :  { %v1841_v34 = vadd.f32 %v2603_v30, %v1801_v19  ;;  %v2626_v35 = vpop.f32.mrf.mxu1 }
 0x132   :  { %v2605_v36 = vpop.f32.mrf.mxu0 }
 0x133   :  { %v1881_v38 = vadd.f32 %v2625_v32, %v1841_v34  ;;  %v2627_v39 = vpop.f32.mrf.mxu1 }
 0x14c   :  { %v2645_v42 = vpop.f32.mrf.mxu0 }
 0x14d   :  { %v2667_v43 = vpop.f32.mrf.mxu1 }
 0x14e   :  { %v2646_v44 = vpop.f32.mrf.mxu0 }
 0x14f   :  { %v2668_v45 = vpop.f32.mrf.mxu1  ;;  %v2647_v46 = vadd.f32 %v2646_v44, %v2645_v42 }
 0x150   :  { %v2669_v47 = vadd.f32 %v2668_v45, %v2667_v43  ;;  %v2648_v48 = vpop.f32.mrf.mxu0 }
 0x151   :  { %v2670_v49 = vpop.f32.mrf.mxu1  ;;  %v1921_v50 = vadd.f32 %v2647_v46, %v1881_v38 }
 0x152   :  { %v2649_v51 = vpop.f32.mrf.mxu0 }
 0x153   :  { %v2671_v52 = vpop.f32.mrf.mxu1  ;;  %v1961_v53 = vadd.f32 %v2669_v47, %v1921_v50 }
 0x16c   :  { %v2689_v54 = vpop.f32.mrf.mxu0 }
 0x16d   :  { %v2711_v55 = vpop.f32.mrf.mxu1 }
 0x16e   :  { %v2690_v56 = vpop.f32.mrf.mxu0 }
 0x16f   :  { %v2712_v57 = vpop.f32.mrf.mxu1  ;;  %v2691_v6 = vadd.f32 %v2690_v56, %v2689_v54 }
 0x170   :  { %v2692_v58 = vpop.f32.mrf.mxu0  ;;  %v2713_v8 = vadd.f32 %v2712_v57, %v2711_v55 }
 0x171   :  { %v2714_v59 = vpop.f32.mrf.mxu1  ;;  %v2001_v7 = vadd.f32 %v2691_v6, %v1961_v53 }
 0x172   :  { %v2693_v60 = vpop.f32.mrf.mxu0 }
 0x173   :  { %v2715_v61 = vpop.f32.mrf.mxu1  ;;  %v2041_v10 = vadd.f32 %v2713_v8, %v2001_v7 }
 0x18c   :  { %v2733_v62 = vpop.f32.mrf.mxu0 }
 0x18d   :  { %v2755_v63 = vpop.f32.mrf.mxu1 }
 0x18e   :  { %v2734_v0 = vpop.f32.mrf.mxu0 }
 0x18f   :  { %v2756_v1 = vpop.f32.mrf.mxu1  ;;  %v2735_v9 = vadd.f32 %v2734_v0, %v2733_v62 }
 0x190   :  { %v2736_v2 = vpop.f32.mrf.mxu0  ;;  %v2757_v12 = vadd.f32 %v2756_v1, %v2755_v63 }
 0x191   :  { %v2758_v3 = vpop.f32.mrf.mxu1  ;;  %v2081_v11 = vadd.f32 %v2735_v9, %v2041_v10 }
 0x192   :  { %v2737_v4 = vpop.f32.mrf.mxu0 }
 0x193   :  { %v2759_v5 = vpop.f32.mrf.mxu1  ;;  %v2121_v17 = vadd.f32 %v2757_v12, %v2081_v11 }
 0x1ac   :  { %v2777_v13 = vpop.f32.mrf.mxu0 }
 0x1ad   :  { %v2799_v14 = vpop.f32.mrf.mxu1 }
 0x1ae   :  { %v2778_v15 = vpop.f32.mrf.mxu0 }
 0x1af   :  { %v2800_v16 = vpop.f32.mrf.mxu1  ;;  %v2779_v18 = vadd.f32 %v2778_v15, %v2777_v13 }
 0x1b0   :  { %v2780_v19 = vpop.f32.mrf.mxu0  ;;  %v2801_v22 = vadd.f32 %v2800_v16, %v2799_v14 }
 0x1b1   :  { %v2802_v20 = vpop.f32.mrf.mxu1  ;;  %v2161_v21 = vadd.f32 %v2779_v18, %v2121_v17 }
 0x1b2   :  { %v2781_v23 = vpop.f32.mrf.mxu0 }
 0x1b3   :  { %v2803_v24 = vpop.f32.mrf.mxu1  ;;  %v2201_v25 = vadd.f32 %v2801_v22, %v2161_v21 }
 0x1b5   :  { %v2206_v26 = vmax.f32 %v2201_v25, 0.0 }
 0x1b7   :  { %v2207_v27 = vpack.c.bf16 %v2206_v26, %v2206_v26 }
 0x1b9   :  { %2831 = vmatmul.mubr.bf16.vlgmr.msra.gmra.mxu0 %v2207_v27 }
 0x279   :  { %v2313_v29 = vpop.f32.mrf.mxu0 }
 0x27a   :  { %v2314_v30 = vadd.f32 %v2532_v28, %v2313_v29 }
 0x27b   :  { %v2832_v31 = vpop.f32.mrf.mxu0 }
 0x27c   :  { %2320 = vst.msk [vmem:[#allocation8] sm:$0xff] %vm2319_vm1, %v2314_v30 }
 0x27d   :  { %v2316_v32 = vpop.f32.mrf.mxu0 }
 0x27f   :  { %v2833_v33 = vpop.f32.mrf.mxu0 }
 0x280   :  { %2325 = vsyncadd [#allocation4], 64  ;;  %s3139_s13 = smov [#allocation8]  }
 0x281   :  { %s2326_s14 = sshll.u32 %s3139_s13, 4  ;;  %s2327_s14 = int_to_ptr.vmem [resolvable:$true] %s2326_s14 }
 0x282   :  { %s3104_s15 = scalar_lea.vmem %s2327_s14, 64  ;;  %s3108_s16 = scalar_lea.vmem %s2327_s14, 128 }
 0x283   :  { %p3105_p1 = scmp.ne.s32.totalorder %s2327_s14, %s3104_s15  ;;  %p3109_p2 = scmp.lt.s32.totalorder %s2327_s14, %s2327_s14 }
 0x284   :  { %p3110_p3 = scmp.lt.s32.totalorder %s3108_s16, %s3104_s15 }
 0x286   :  { %p3111_p4 = por %p3110_p3, %p3109_p2 }
 0x288   :  { %p3112_p5 = pnand %p3111_p4, %p3105_p1 }
 0x28a   :  { %3115 = shalt.err (!%p3112_p5)
}
 0x28b   :  { %2332 = dma.vmem_to_hbm [thread:$0]  %s2327_s14, 64, %s3202_s5, [#allocation4], %s3131_s21, %s3131_s21, %s3132_s22  }
 0x28c   :  { %3128 = dma.done.wait [#allocation4], 128  }
 0x28d   :  { %3129 = vsyncadd [#allocation4], 4294967168 }
 0x28e   :  { %2336 = vsyncpa [#allocation3], 1 }
 0x28f   :  { %2337 = vsyncpa [#allocation6], 1 }
 0x290   :  { %2338 = vsyncpa [#allocation4], 1 }

</bundles_post_ra>
